<compile_context>
chip_gen: v7x
topology: tpu7x:2x2x1
jax: 0.10.0
libtpu: 0.0.40
codegen_flags: <defaults>
</compile_context>

<pallas_src>
import jax
import jax.numpy as jnp
from jax.experimental import pallas as pl
from jax.experimental.pallas import tpu as pltpu

LANE = 128
SIZES = (1000, 256, 128, 256, 128, 8)   # in, fc1, fc2, fc3, fc4, fc5 sizes
_TM_CAP = 256                           # fills v6e/v7x 256-tall MXU; 2 M-passes on v5e


def _round_up(x, m):
    return (x + m - 1) // m * m


def _pick_tm(batch):
    """Batch tile size.

    * batch <= 16: use the full batch as one block (no padding op anywhere).
    * otherwise: 16-aligned (bf16 sublane packing), capped at 256, and sized to
      ~batch/2 when that fits so the grid has >= 2 steps and the "parallel" axis
      can shard over both TensorCores on v7x.
    """
    if batch <= 16:
        return batch
    return min(_TM_CAP, _round_up(pl.cdiv(batch, 2), 16))


# --------------------------------------------------------------------------- #
# Fused MLP kernel: x -> relu(fc1) -> relu(fc2) -> relu(fc3) -> relu(fc4) -> fc5 -> sigmoid
# (dropout p=0.5 layers are identity in eval mode)
# --------------------------------------------------------------------------- #
def _mlp_kernel(x_ref,
                w1_ref, b1_ref, w2_ref, b2_ref, w3_ref, b3_ref,
                w4_ref, b4_ref, w5_ref, b5_ref,
                o_ref):
    # x arrives as f32 straight from HBM (no wrapper pad/cast op); cast to bf16
    # here so every matmul runs bf16 x bf16 on the MXU with f32 accumulation.
    h = x_ref[...].astype(jnp.bfloat16)

    # fc1 + ReLU
    h = jnp.dot(h, w1_ref[...], preferred_element_type=jnp.float32) + b1_ref[...]
    h = jnp.maximum(h, 0.0)
    # fc2 + ReLU
    h = jnp.dot(h.astype(jnp.bfloat16), w2_ref[...],
                preferred_element_type=jnp.float32) + b2_ref[...]
    h = jnp.maximum(h, 0.0)
    # fc3 + ReLU
    h = jnp.dot(h.astype(jnp.bfloat16), w3_ref[...],
                preferred_element_type=jnp.float32) + b3_ref[...]
    h = jnp.maximum(h, 0.0)
    # fc4 + ReLU
    h = jnp.dot(h.astype(jnp.bfloat16), w4_ref[...],
                preferred_element_type=jnp.float32) + b4_ref[...]
    h = jnp.maximum(h, 0.0)
    # fc5 + sigmoid (eval branch of the module)
    out = jnp.dot(h.astype(jnp.bfloat16), w5_ref[...],
                  preferred_element_type=jnp.float32) + b5_ref[...]
    # Exact, numerically safe sigmoid: for very negative logits exp(-out) -> +inf
    # and exact IEEE division gives 1/inf == 0 (the previous approx-reciprocal
    # EUP path is what made this unsafe). exp goes to the EUP slot anyway.
    o_ref[...] = (1.0 / (1.0 + jnp.exp(-out))).astype(o_ref.dtype)


# --------------------------------------------------------------------------- #
# Parameter handling
# --------------------------------------------------------------------------- #
def init_params(key):
    """Torch-style Linear params: w_i (out,in), b_i (out,), uniform(+-1/sqrt(fan_in))."""
    def u(k, shape, fan_in):
        bound = 1.0 / float(fan_in) ** 0.5
        return jax.random.uniform(k, shape, jnp.float32, -bound, bound)

    ks = jax.random.split(key, 10)
    p = {}
    for idx in range(5):
        fin, fout = SIZES[idx], SIZES[idx + 1]
        p[f"w{idx + 1}"] = u(ks[2 * idx], (fout, fin), fin)
        p[f"b{idx + 1}"] = u(ks[2 * idx + 1], (fout,), fin)
    return p


def prepare_params(params):
    """One-time prep: transpose to (in, out), cast W to bf16, pad ONLY the output
    (lane) dim to a multiple of 128 (only fc5 needs it: 8 -> 128). The contraction
    dim (K=1000 for fc1) is NOT padded -- full-extent blocks make that legal and it
    lets x enter the kernel completely unpadded."""
    prepped = {}
    for idx in range(1, 6):
        w = params[f"w{idx}"]                       # (out, in) torch layout
        b = params[f"b{idx}"]
        fout, fin = w.shape
        foutp = _round_up(fout, LANE)
        w_io = jnp.transpose(w).astype(jnp.bfloat16)          # (in, out)
        b_row = b.astype(jnp.float32)[None, :]                # (1, out)
        if foutp != fout:
            w_io = jnp.pad(w_io, ((0, 0), (0, foutp - fout)))
            b_row = jnp.pad(b_row, ((0, 0), (0, foutp - fout)))
        prepped[f"w{idx}"] = w_io
        prepped[f"b{idx}"] = b_row
    return prepped


# --------------------------------------------------------------------------- #
# Forward
# --------------------------------------------------------------------------- #
def five_layer_forward(prepped, x, training=False):
    """x: (B, 1000) -> (B, 8). Eval semantics: dropout = identity, sigmoid applied."""
    if training:
        # TODO(synk): training-mode dropout (p=0.5) needs in-kernel pltpu.prng_*;
        # refuse rather than silently returning eval-mode results.
        raise NotImplementedError("five_layer_forward implements eval semantics only")

    B, K = x.shape
    assert K == SIZES[0]

    NP = prepped["w5"].shape[1]            # 128 (true out = 8), lane-dense out block
    TM = _pick_tm(B)
    grid_m = pl.cdiv(B, TM)

    def _resident(arr):                    # constant index_map -> stays in VMEM
        return pl.BlockSpec(arr.shape, lambda i: (0, 0))

    w1, b1 = prepped["w1"], prepped["b1"]
    w2, b2 = prepped["w2"], prepped["b2"]
    w3, b3 = prepped["w3"], prepped["b3"]
    w4, b4 = prepped["w4"], prepped["b4"]
    w5, b5 = prepped["w5"], prepped["b5"]

    # Advisory cost hint so XLA schedules neighbors around this tiny fused call.
    flops = 2 * B * sum(SIZES[i] * SIZES[i + 1] for i in range(5))
    weight_bytes = sum(int(v.size) * v.dtype.itemsize for v in prepped.values())
    bytes_accessed = int(B * K * x.dtype.itemsize + weight_bytes + B * NP * 4)
    cost = pl.CostEstimate(flops=int(flops), transcendentals=int(B * NP),
                           bytes_accessed=bytes_accessed)

    out = pl.pallas_call(
        _mlp_kernel,
        out_shape=jax.ShapeDtypeStruct((B, NP), jnp.float32),
        grid_spec=pltpu.PrefetchScalarGridSpec(
            num_scalar_prefetch=0,
            grid=(grid_m,),                                   # batch tiles only
            in_specs=[
                pl.BlockSpec((TM, K), lambda i: (i, 0)),      # x, unpadded f32
                _resident(w1), _resident(b1),
                _resident(w2), _resident(b2),
                _resident(w3), _resident(b3),
                _resident(w4), _resident(b4),
                _resident(w5), _resident(b5),
            ],
            out_specs=pl.BlockSpec((TM, NP), lambda i: (i, 0)),
        ),
        compiler_params=pltpu.CompilerParams(
            dimension_semantics=("parallel",)),
        cost_estimate=cost,
    )(x, w1, b1, w2, b2, w3, b3, w4, b4, w5, b5)

    # Padded output lanes hold sigmoid(0)=0.5 -- keep this slice so consumers
    # never see them. Row dim is already exactly B (no row slice needed).
    return out[:, :SIZES[-1]]


def _ref_forward(params, x):
    """Pure-JAX f32 reference (eval mode) for a sanity tolerance check."""
    h = x
    for idx in range(1, 5):
        h = jax.nn.relu(h @ params[f"w{idx}"].T + params[f"b{idx}"])
    out = h @ params["w5"].T + params["b5"]
    return jax.nn.sigmoid(out)


if __name__ == "__main__":
    key = jax.random.PRNGKey(0)
    pk, xk = jax.random.split(key)

    params = init_params(pk)
    prepped = prepare_params(params)       # one-time weight prep (transpose/cast/pad fc5)

    x = jax.random.normal(xk, (2, 1000), jnp.float32)   # batch=2, in_features=1000

    fwd = jax.jit(five_layer_forward)
    labels = fwd(prepped, x)
    jax.block_until_ready(labels)

    assert labels.shape == (2, 8)
    assert bool(jnp.all(jnp.isfinite(labels)))

    ref = _ref_forward(params, x)
    assert bool(jnp.max(jnp.abs(labels - ref)) < 5e-2)   # bf16-operand tolerance

    print("KERNEL_OK")
</pallas_src>

<mosaic_0001>
module attributes {stable_mosaic.version = 11 : i64} {
  func.func @_mlp_kernel(%arg0: i32, %arg1: memref<2x1000xf32, #tpu.memory_space<vmem>>, %arg2: memref<1000x256xbf16, #tpu.memory_space<vmem>>, %arg3: memref<1x256xf32, #tpu.memory_space<vmem>>, %arg4: memref<256x128xbf16, #tpu.memory_space<vmem>>, %arg5: memref<1x128xf32, #tpu.memory_space<vmem>>, %arg6: memref<128x256xbf16, #tpu.memory_space<vmem>>, %arg7: memref<1x256xf32, #tpu.memory_space<vmem>>, %arg8: memref<256x128xbf16, #tpu.memory_space<vmem>>, %arg9: memref<1x128xf32, #tpu.memory_space<vmem>>, %arg10: memref<128x128xbf16, #tpu.memory_space<vmem>>, %arg11: memref<1x128xf32, #tpu.memory_space<vmem>>, %arg12: memref<2x128xf32, #tpu.memory_space<vmem>>) attributes {dimension_semantics = [#tpu.dimension_semantics<parallel>], iteration_bounds = array<i64: 1>, scalar_prefetch = 0 : i64, scratch_operands = 0 : i64, tpu.core_type = #tpu.core_type<tc>, window_params = [{transform_indices = @transform_0, window_bounds = array<i64: 2, 1000>}, {pipeline_mode = #tpu.pipeline_mode<synchronous>, transform_indices = @transform_1, window_bounds = array<i64: 1000, 256>}, {pipeline_mode = #tpu.pipeline_mode<synchronous>, transform_indices = @transform_2, window_bounds = array<i64: 1, 256>}, {pipeline_mode = #tpu.pipeline_mode<synchronous>, transform_indices = @transform_3, window_bounds = array<i64: 256, 128>}, {pipeline_mode = #tpu.pipeline_mode<synchronous>, transform_indices = @transform_4, window_bounds = array<i64: 1, 128>}, {pipeline_mode = #tpu.pipeline_mode<synchronous>, transform_indices = @transform_5, window_bounds = array<i64: 128, 256>}, {pipeline_mode = #tpu.pipeline_mode<synchronous>, transform_indices = @transform_6, window_bounds = array<i64: 1, 256>}, {pipeline_mode = #tpu.pipeline_mode<synchronous>, transform_indices = @transform_7, window_bounds = array<i64: 256, 128>}, {pipeline_mode = #tpu.pipeline_mode<synchronous>, transform_indices = @transform_8, window_bounds = array<i64: 1, 128>}, {pipeline_mode = #tpu.pipeline_mode<synchronous>, transform_indices = @transform_9, window_bounds = array<i64: 128, 128>}, {pipeline_mode = #tpu.pipeline_mode<synchronous>, transform_indices = @transform_10, window_bounds = array<i64: 1, 128>}, {transform_indices = @transform_11, window_bounds = array<i64: 2, 128>}]} {
    %c0 = arith.constant 0 : index
    %c0_0 = arith.constant 0 : index
    %0 = vector.load %arg1[%c0, %c0_0] : memref<2x1000xf32, #tpu.memory_space<vmem>>, vector<2x1000xf32>
    %1 = arith.truncf %0 : vector<2x1000xf32> to vector<2x1000xbf16>
    %c0_1 = arith.constant 0 : index
    %c0_2 = arith.constant 0 : index
    %2 = vector.load %arg2[%c0_1, %c0_2] : memref<1000x256xbf16, #tpu.memory_space<vmem>>, vector<1000x256xbf16>
    %cst = arith.constant dense<0.000000e+00> : vector<2x256xf32>
    %3 = tpu.matmul %1, %2, %cst {dimension_numbers = #tpu.dot_dimension_numbers<[1], [0], [0], [1], [0, 0, 1, 1], [], []>} : vector<2x1000xbf16>, vector<1000x256xbf16>, vector<2x256xf32> -> vector<2x256xf32>
    %c0_3 = arith.constant 0 : index
    %c0_4 = arith.constant 0 : index
    %4 = vector.load %arg3[%c0_3, %c0_4] : memref<1x256xf32, #tpu.memory_space<vmem>>, vector<1x256xf32>
    %5 = vector.broadcast %4 : vector<1x256xf32> to vector<2x256xf32>
    %6 = arith.addf %3, %5 : vector<2x256xf32>
    %cst_5 = arith.constant 0.000000e+00 : f32
    %7 = vector.broadcast %cst_5 : f32 to vector<2x256xf32>
    %8 = arith.maximumf %6, %7 : vector<2x256xf32>
    %9 = arith.truncf %8 : vector<2x256xf32> to vector<2x256xbf16>
    %c0_6 = arith.constant 0 : index
    %c0_7 = arith.constant 0 : index
    %10 = vector.load %arg4[%c0_6, %c0_7] : memref<256x128xbf16, #tpu.memory_space<vmem>>, vector<256x128xbf16>
    %cst_8 = arith.constant dense<0.000000e+00> : vector<2x128xf32>
    %11 = tpu.matmul %9, %10, %cst_8 {dimension_numbers = #tpu.dot_dimension_numbers<[1], [0], [0], [1], [0, 0, 1, 1], [], []>} : vector<2x256xbf16>, vector<256x128xbf16>, vector<2x128xf32> -> vector<2x128xf32>
    %c0_9 = arith.constant 0 : index
    %c0_10 = arith.constant 0 : index
    %12 = vector.load %arg5[%c0_9, %c0_10] : memref<1x128xf32, #tpu.memory_space<vmem>>, vector<1x128xf32>
    %13 = vector.broadcast %12 : vector<1x128xf32> to vector<2x128xf32>
    %14 = arith.addf %11, %13 : vector<2x128xf32>
    %cst_11 = arith.constant 0.000000e+00 : f32
    %15 = vector.broadcast %cst_11 : f32 to vector<2x128xf32>
    %16 = arith.maximumf %14, %15 : vector<2x128xf32>
    %17 = arith.truncf %16 : vector<2x128xf32> to vector<2x128xbf16>
    %c0_12 = arith.constant 0 : index
    %c0_13 = arith.constant 0 : index
    %18 = vector.load %arg6[%c0_12, %c0_13] : memref<128x256xbf16, #tpu.memory_space<vmem>>, vector<128x256xbf16>
    %cst_14 = arith.constant dense<0.000000e+00> : vector<2x256xf32>
    %19 = tpu.matmul %17, %18, %cst_14 {dimension_numbers = #tpu.dot_dimension_numbers<[1], [0], [0], [1], [0, 0, 1, 1], [], []>} : vector<2x128xbf16>, vector<128x256xbf16>, vector<2x256xf32> -> vector<2x256xf32>
    %c0_15 = arith.constant 0 : index
    %c0_16 = arith.constant 0 : index
    %20 = vector.load %arg7[%c0_15, %c0_16] : memref<1x256xf32, #tpu.memory_space<vmem>>, vector<1x256xf32>
    %21 = vector.broadcast %20 : vector<1x256xf32> to vector<2x256xf32>
    %22 = arith.addf %19, %21 : vector<2x256xf32>
    %cst_17 = arith.constant 0.000000e+00 : f32
    %23 = vector.broadcast %cst_17 : f32 to vector<2x256xf32>
    %24 = arith.maximumf %22, %23 : vector<2x256xf32>
    %25 = arith.truncf %24 : vector<2x256xf32> to vector<2x256xbf16>
    %c0_18 = arith.constant 0 : index
    %c0_19 = arith.constant 0 : index
    %26 = vector.load %arg8[%c0_18, %c0_19] : memref<256x128xbf16, #tpu.memory_space<vmem>>, vector<256x128xbf16>
    %cst_20 = arith.constant dense<0.000000e+00> : vector<2x128xf32>
    %27 = tpu.matmul %25, %26, %cst_20 {dimension_numbers = #tpu.dot_dimension_numbers<[1], [0], [0], [1], [0, 0, 1, 1], [], []>} : vector<2x256xbf16>, vector<256x128xbf16>, vector<2x128xf32> -> vector<2x128xf32>
    %c0_21 = arith.constant 0 : index
    %c0_22 = arith.constant 0 : index
    %28 = vector.load %arg9[%c0_21, %c0_22] : memref<1x128xf32, #tpu.memory_space<vmem>>, vector<1x128xf32>
    %29 = vector.broadcast %28 : vector<1x128xf32> to vector<2x128xf32>
    %30 = arith.addf %27, %29 : vector<2x128xf32>
    %cst_23 = arith.constant 0.000000e+00 : f32
    %31 = vector.broadcast %cst_23 : f32 to vector<2x128xf32>
    %32 = arith.maximumf %30, %31 : vector<2x128xf32>
    %33 = arith.truncf %32 : vector<2x128xf32> to vector<2x128xbf16>
    %c0_24 = arith.constant 0 : index
    %c0_25 = arith.constant 0 : index
    %34 = vector.load %arg10[%c0_24, %c0_25] : memref<128x128xbf16, #tpu.memory_space<vmem>>, vector<128x128xbf16>
    %cst_26 = arith.constant dense<0.000000e+00> : vector<2x128xf32>
    %35 = tpu.matmul %33, %34, %cst_26 {dimension_numbers = #tpu.dot_dimension_numbers<[1], [0], [0], [1], [0, 0, 1, 1], [], []>} : vector<2x128xbf16>, vector<128x128xbf16>, vector<2x128xf32> -> vector<2x128xf32>
    %c0_27 = arith.constant 0 : index
    %c0_28 = arith.constant 0 : index
    %36 = vector.load %arg11[%c0_27, %c0_28] : memref<1x128xf32, #tpu.memory_space<vmem>>, vector<1x128xf32>
    %37 = vector.broadcast %36 : vector<1x128xf32> to vector<2x128xf32>
    %38 = arith.addf %35, %37 : vector<2x128xf32>
    %cst_29 = arith.constant 0.000000e+00 : f32
    %39 = vector.broadcast %cst_29 : f32 to vector<2x128xf32>
    %40 = arith.subf %39, %38 : vector<2x128xf32>
    %41 = math.exp %40 : vector<2x128xf32>
    %cst_30 = arith.constant 1.000000e+00 : f32
    %42 = vector.broadcast %cst_30 : f32 to vector<2x128xf32>
    %43 = arith.addf %42, %41 : vector<2x128xf32>
    %cst_31 = arith.constant 1.000000e+00 : f32
    %44 = vector.broadcast %cst_31 : f32 to vector<2x128xf32>
    %45 = arith.divf %44, %43 : vector<2x128xf32>
    %c0_32 = arith.constant 0 : index
    %c0_33 = arith.constant 0 : index
    %46 = vector.load %arg12[%c0_32, %c0_33] : memref<2x128xf32, #tpu.memory_space<vmem>>, vector<2x128xf32>
    tpu.vector_store %arg12[%c0_32, %c0_33], %45 {strides = array<i32>} : memref<2x128xf32, #tpu.memory_space<vmem>>, vector<2x128xf32>,
    return
  }
  func.func @transform_0(%arg0: i32) -> (i32, i32) {
    %c0_i32 = arith.constant 0 : i32
    %c0_i32_0 = arith.constant 0 : i32
    return %arg0, %c0_i32 : i32, i32
  }
  func.func @transform_1(%arg0: i32) -> (i32, i32) {
    %c0_i32 = arith.constant 0 : i32
    %c0_i32_0 = arith.constant 0 : i32
    %c0_i32_1 = arith.constant 0 : i32
    return %c0_i32, %c0_i32_0 : i32, i32
  }
  func.func @transform_2(%arg0: i32) -> (i32, i32) {
    %c0_i32 = arith.constant 0 : i32
    %c0_i32_0 = arith.constant 0 : i32
    %c0_i32_1 = arith.constant 0 : i32
    return %c0_i32, %c0_i32_0 : i32, i32
  }
  func.func @transform_3(%arg0: i32) -> (i32, i32) {
    %c0_i32 = arith.constant 0 : i32
    %c0_i32_0 = arith.constant 0 : i32
    %c0_i32_1 = arith.constant 0 : i32
    return %c0_i32, %c0_i32_0 : i32, i32
  }
  func.func @transform_4(%arg0: i32) -> (i32, i32) {
    %c0_i32 = arith.constant 0 : i32
    %c0_i32_0 = arith.constant 0 : i32
    %c0_i32_1 = arith.constant 0 : i32
    return %c0_i32, %c0_i32_0 : i32, i32
  }
  func.func @transform_5(%arg0: i32) -> (i32, i32) {
    %c0_i32 = arith.constant 0 : i32
    %c0_i32_0 = arith.constant 0 : i32
    %c0_i32_1 = arith.constant 0 : i32
    return %c0_i32, %c0_i32_0 : i32, i32
  }
  func.func @transform_6(%arg0: i32) -> (i32, i32) {
    %c0_i32 = arith.constant 0 : i32
    %c0_i32_0 = arith.constant 0 : i32
    %c0_i32_1 = arith.constant 0 : i32
    return %c0_i32, %c0_i32_0 : i32, i32
  }
  func.func @transform_7(%arg0: i32) -> (i32, i32) {
    %c0_i32 = arith.constant 0 : i32
    %c0_i32_0 = arith.constant 0 : i32
    %c0_i32_1 = arith.constant 0 : i32
    return %c0_i32, %c0_i32_0 : i32, i32
  }
  func.func @transform_8(%arg0: i32) -> (i32, i32) {
    %c0_i32 = arith.constant 0 : i32
    %c0_i32_0 = arith.constant 0 : i32
    %c0_i32_1 = arith.constant 0 : i32
    return %c0_i32, %c0_i32_0 : i32, i32
  }
  func.func @transform_9(%arg0: i32) -> (i32, i32) {
    %c0_i32 = arith.constant 0 : i32
    %c0_i32_0 = arith.constant 0 : i32
    %c0_i32_1 = arith.constant 0 : i32
    return %c0_i32, %c0_i32_0 : i32, i32
  }
  func.func @transform_10(%arg0: i32) -> (i32, i32) {
    %c0_i32 = arith.constant 0 : i32
    %c0_i32_0 = arith.constant 0 : i32
    %c0_i32_1 = arith.constant 0 : i32
    return %c0_i32, %c0_i32_0 : i32, i32
  }
  func.func @transform_11(%arg0: i32) -> (i32, i32) {
    %c0_i32 = arith.constant 0 : i32
    %c0_i32_0 = arith.constant 0 : i32
    return %arg0, %c0_i32 : i32, i32
  }
}

</mosaic_0001>

<bundles_post_ra>
// kernel: five_layer_forward.1
= control target key start
LH: loop header
LB: loop body
LE: loop exit
PB: predicated region body
PF: predicated region fallthrough
CT: control target
= control target key end

     0   :  { %16 = vsyncpa [#allocation3], 0  ;;  %s2708_s0 = inlined_call_operand.vmem [shape: f32[2,1000], index: 0, kind: input, shape index: {}]   ;;  %s2709_s1 = inlined_call_operand.hbm [shape: bf16[1000,256], index: 1, kind: input, shape index: {}]   ;;  %s2710_s2 = inlined_call_operand.hbm [shape: f32[1,256], index: 2, kind: input, shape index: {}]   ;;  %s2711_s3 = inlined_call_operand.hbm [shape: bf16[256,128], index: 3, kind: input, shape index: {}]   ;;  %s2712_s4 = inlined_call_operand.vmem [shape: f32[1,128], index: 4, kind: input, shape index: {}]   ;;  %s2713_s5 = inlined_call_operand.hbm [shape: bf16[128,256], index: 5, kind: input, shape index: {}]   ;;  %s2714_s6 = inlined_call_operand.vmem [shape: f32[1,256], index: 6, kind: input, shape index: {}]   ;;  %s2715_s7 = inlined_call_operand.hbm [shape: bf16[256,128], index: 7, kind: input, shape index: {}]   ;;  %s2716_s8 = inlined_call_operand.vmem [shape: f32[1,128], index: 8, kind: input, shape index: {}]   ;;  %s2717_s9 = inlined_call_operand.hbm [shape: bf16[128,128], index: 9, kind: input, shape index: {}]   ;;  %s2718_s10 = inlined_call_operand.vmem [shape: f32[1,128], index: 10, kind: input, shape index: {}]   ;;  %s2719_s11 = inlined_call_operand.hbm [shape: f32[2,128], index: 11, kind: output, shape index: {}]  }
   0x1   :  { %17 = vsyncpa [#allocation6], 0 }
   0x2   :  { %18 = vsyncpa [#allocation9], 0 }
   0x3   :  { %19 = vsyncpa [#allocation12], 0 }
   0x4   :  { %20 = vsyncpa [#allocation4], 0  ;;  %s2467_s17 = smov [#allocation5]   ;;  %s2303_s21 = scalar_lea.hbm %s2710_s2, 32 }
   0x5   :  { %s41_s18 = sshll.u32 %s2467_s17, 4  ;;  %p2304_p0 = scmp.ne.s32.totalorder %s2710_s2, %s2303_s21  ;;  %s42_s18 = int_to_ptr.vmem [resolvable:$true] %s41_s18 }
   0x6   :  { %p2307_p1 = scmp.lt.u32.totalorder %s2303_s21, %s2710_s2 }
   0x8   :  { %p2309_p2 = pnand %p2307_p1, %p2304_p0 }
   0xa   :  { %2312 = shalt.err (!%p2309_p2)
}
   0xb   :  { %s2313_s26 = scalar_lea.vmem %s42_s18, 32  ;;  %p2318_p4 = scmp.lt.s32.totalorder %s42_s18, %s42_s18 }
   0xc   :  { %p2314_p3 = scmp.ne.s32.totalorder %s42_s18, %s2313_s26  ;;  %p2319_p5 = scmp.lt.s32.totalorder %s2313_s26, %s2313_s26 }
   0xe   :  { %p2320_p6 = por %p2319_p5, %p2318_p4 }
  0x10   :  { %p2321_p7 = pnand %p2320_p6, %p2314_p3 }
  0x12   :  { %2324 = shalt.err (!%p2321_p7)
}
  0x13   :  { %44 = dma.hbm_to_vmem [thread:$0]  %s2710_s2, 32, %s42_s18, [#allocation6]  }
  0x14   :  { %s2468_s29 = smov [#allocation8]   ;;  %s2469_s12 = smov [#allocation2]  }
  0x15   :  { %s64_s30 = sshll.u32 %s2468_s29, 4  ;;  %s28_s13 = sshll.u32 %s2469_s12, 4  ;;  %s65_s30 = int_to_ptr.vmem [resolvable:$true] %s64_s30  ;;  %s29_s13 = int_to_ptr.vmem [resolvable:$true] %s28_s13 }
  0x16   :  { %s2325_s16 = scalar_lea.hbm %s2713_s5, 2048 }
  0x17   :  { %p2326_p8 = scmp.ne.s32.totalorder %s2713_s5, %s2325_s16  ;;  %p2329_p9 = scmp.lt.u32.totalorder %s2325_s16, %s2713_s5 }
  0x19   :  { %p2331_p10 = pnand %p2329_p9, %p2326_p8 }
  0x1b   :  { %2334 = shalt.err (!%p2331_p10)
}
  0x1c   :  { %s2335_s2 = scalar_lea.vmem %s65_s30, 2048  ;;  %p2340_p12 = scmp.lt.s32.totalorder %s65_s30, %s65_s30 }
  0x1d   :  { %p2336_p11 = scmp.ne.s32.totalorder %s65_s30, %s2335_s2  ;;  %p2341_p13 = scmp.lt.s32.totalorder %s2335_s2, %s2335_s2 }
  0x1f   :  { %p2342_p0 = por %p2341_p13, %p2340_p12 }
  0x21   :  { %p2343_p1 = pnand %p2342_p0, %p2336_p11 }
  0x23   :  { %2346 = shalt.err (!%p2343_p1)
}
  0x24   :  { %s2470_s18 = smov 128   ;;  %s2471_s22 = smov 8  }
  0x25   :  { %70 = dma.hbm_to_vmem [thread:$0]  %s2713_s5, 2048, %s65_s30, [#allocation9], %s2470_s18, %s2470_s18, %s2471_s22  }
  0x26   :  { %s2347_s27 = scalar_lea.hbm %s2709_s1, 16000 }
  0x27   :  { %p2348_p2 = scmp.ne.s32.totalorder %s2709_s1, %s2347_s27  ;;  %p2351_p3 = scmp.lt.u32.totalorder %s2347_s27, %s2709_s1 }
  0x29   :  { %p2353_p4 = pnand %p2351_p3, %p2348_p2 }
  0x2b   :  { %2356 = shalt.err (!%p2353_p4)
}
  0x2c   :  { %s2357_s15 = scalar_lea.vmem %s29_s13, 16000  ;;  %p2362_p6 = scmp.lt.s32.totalorder %s29_s13, %s29_s13 }
  0x2d   :  { %p2358_p5 = scmp.ne.s32.totalorder %s29_s13, %s2357_s15  ;;  %p2363_p7 = scmp.lt.s32.totalorder %s2357_s15, %s2357_s15 }
  0x2f   :  { %p2364_p8 = por %p2363_p7, %p2362_p6 }
  0x31   :  { %p2365_p9 = pnand %p2364_p8, %p2358_p5 }
  0x33   :  { %2368 = shalt.err (!%p2365_p9)
}
  0x34   :  { %34 = dma.hbm_to_vmem [thread:$0]  %s2709_s1, 16000, %s29_s13, [#allocation3], %s2470_s18, %s2470_s18, %s2471_s22  }
  0x35   :  { %s2472_s16 = smov [#allocation7]   ;;  %s2369_s21 = scalar_lea.hbm %s2711_s3, 2048 }
  0x36   :  { %s50_s17 = sshll.u32 %s2472_s16, 4  ;;  %p2370_p10 = scmp.ne.s32.totalorder %s2711_s3, %s2369_s21  ;;  %s51_s17 = int_to_ptr.vmem [resolvable:$true] %s50_s17 }
  0x37   :  { %p2373_p11 = scmp.lt.u32.totalorder %s2369_s21, %s2711_s3 }
  0x39   :  { %p2375_p12 = pnand %p2373_p11, %p2370_p10 }
  0x3b   :  { %2378 = shalt.err (!%p2375_p12)
}
  0x3c   :  { %s2379_s26 = scalar_lea.vmem %s51_s17, 2048  ;;  %p2384_p0 = scmp.lt.s32.totalorder %s51_s17, %s51_s17 }
  0x3d   :  { %p2380_p13 = scmp.ne.s32.totalorder %s51_s17, %s2379_s26  ;;  %p2385_p1 = scmp.lt.s32.totalorder %s2379_s26, %s2379_s26 }
  0x3f   :  { %p2386_p2 = por %p2385_p1, %p2384_p0 }
  0x41   :  { %p2387_p3 = pnand %p2386_p2, %p2380_p13 }
  0x43   :  { %2390 = shalt.err (!%p2387_p3)
}
  0x44   :  { %s2473_s1 = smov 64   ;;  %s2474_s13 = smov 4  }
  0x45   :  { %56 = dma.hbm_to_vmem [thread:$0]  %s2711_s3, 2048, %s51_s17, [#allocation6], %s2473_s1, %s2473_s1, %s2474_s13  }
  0x46   :  { %s2475_s27 = smov [#allocation10]   ;;  %s2476_s29 = smov [#allocation11]  }
  0x47   :  { %s78_s28 = sshll.u32 %s2475_s27, 4  ;;  %s92_s12 = sshll.u32 %s2476_s29, 4  ;;  %s79_s28 = int_to_ptr.vmem [resolvable:$true] %s78_s28  ;;  %s2593_s12 = int_to_ptr.vmem [resolvable:$true] %s92_s12 }
  0x48   :  { %s2391_s5 = scalar_lea.hbm %s2715_s7, 2048 }
  0x49   :  { %p2392_p4 = scmp.ne.s32.totalorder %s2715_s7, %s2391_s5  ;;  %p2395_p5 = scmp.lt.u32.totalorder %s2391_s5, %s2715_s7 }
  0x4b   :  { %p2397_p6 = pnand %p2395_p5, %p2392_p4 }
  0x4d   :  { %2400 = shalt.err (!%p2397_p6)
}
  0x4e   :  { %s2401_s3 = scalar_lea.vmem %s79_s28, 2048  ;;  %p2406_p8 = scmp.lt.s32.totalorder %s79_s28, %s79_s28 }
  0x4f   :  { %p2402_p7 = scmp.ne.s32.totalorder %s79_s28, %s2401_s3  ;;  %p2407_p9 = scmp.lt.s32.totalorder %s2401_s3, %s2401_s3 }
  0x51   :  { %p2408_p10 = por %p2407_p9, %p2406_p8 }
  0x53   :  { %p2409_p11 = pnand %p2408_p10, %p2402_p7 }
  0x55   :  { %2412 = shalt.err (!%p2409_p11)
}
  0x56   :  { %84 = dma.hbm_to_vmem [thread:$0]  %s2715_s7, 2048, %s79_s28, [#allocation9], %s2473_s1, %s2473_s1, %s2474_s13  }
  0x57   :  { %s2413_s24 = scalar_lea.hbm %s2717_s9, 1024 }
  0x58   :  { %p2414_p12 = scmp.ne.s32.totalorder %s2717_s9, %s2413_s24  ;;  %p2417_p13 = scmp.lt.u32.totalorder %s2413_s24, %s2717_s9 }
  0x5a   :  { %p2419_p0 = pnand %p2417_p13, %p2414_p12 }
  0x5c   :  { %2422 = shalt.err (!%p2419_p0)
}
  0x5d   :  { %s2423_s27 = scalar_lea.vmem %s2593_s12, 1024  ;;  %p2428_p2 = scmp.lt.s32.totalorder %s2593_s12, %s2593_s12 }
  0x5e   :  { %p2424_p1 = scmp.ne.s32.totalorder %s2593_s12, %s2423_s27  ;;  %p2429_p3 = scmp.lt.s32.totalorder %s2423_s27, %s2423_s27 }
  0x60   :  { %p2430_p4 = por %p2429_p3, %p2428_p2 }
  0x62   :  { %p2431_p5 = pnand %p2430_p4, %p2424_p1 }
  0x64   :  { %2434 = shalt.err (!%p2431_p5)
}
  0x65   :  { %98 = dma.hbm_to_vmem [thread:$0]  %s2717_s9, 1024, %s2593_s12, [#allocation12], %s2473_s1, %s2473_s1, %s2474_s13  }
  0x66   :  { %2457 = dma.done.wait [#allocation3], 16000  }
  0x67   :  { %2458 = vsyncadd [#allocation3], 4294951296 }
  0x68   :  { %2459 = dma.done.wait [#allocation6], 2080  }
  0x69   :  { %2460 = vsyncadd [#allocation6], 4294965216 }
  0x6a   :  { %2461 = dma.done.wait [#allocation9], 4096  }
  0x6b   :  { %2462 = vsyncadd [#allocation9], 4294963200 }
  0x6c   :  { %2463 = dma.done.wait [#allocation12], 1024  }
  0x6d   :  { %2464 = vsyncadd [#allocation12], 4294966272  ;;  %v2045_v0 = vld [vmem:[#allocation2 + $0x104] ss:$8 sps:$4 sm:$0xff]   ;;  %v2047_v1 = vld [vmem:[#allocation2 + $0x100] ss:$8 sps:$4 sm:$0xff]   ;;  %v128_v11 = vlaneseq }
  0x6e   :  { %988 = vmatprep.subr.bf16.mxu0 %v2045_v0  ;;  %v2048_v2 = vld [vmem:[#allocation2 + $0x114] ss:$8 sps:$4 sm:$0xff]   ;;  %v2050_v3 = vld [vmem:[#allocation2 + $0x110] ss:$8 sps:$4 sm:$0xff]   ;;  %v2051_v4 = vld [vmem:[#allocation2 + $0x124] ss:$8 sps:$4 sm:$0xff]  }
  0x6f   :  { %989 = vmatpush1.bf16.msra.mxu0 %v2047_v1  ;;  %v2053_v5 = vld [vmem:[#allocation2 + $0x120] ss:$8 sps:$4 sm:$0xff]   ;;  %v2054_v6 = vld [vmem:[#allocation2 + $0x134] ss:$8 sps:$4 sm:$0xff]   ;;  %v2056_v7 = vld [vmem:[#allocation2 + $0x130] ss:$8 sps:$4 sm:$0xff]  }
  0x70   :  { %990 = vmatprep.subr.bf16.mxu0 %v2048_v2  ;;  %v2057_v8 = vld [vmem:[#allocation2 + $0x144] ss:$8 sps:$4 sm:$0xff]   ;;  %v2477_v9 = vmov 1983009808   ;;  %v2059_v12 = vld [vmem:[#allocation2 + $0x140] ss:$8 sps:$4 sm:$0xff]  }
  0x71   :  { %v126_v10 = vunpack.c.l.s4 %v2477_v9  ;;  %v2060_v13 = vld [vmem:[#allocation2 + $0x154] ss:$8 sps:$4 sm:$0xff]   ;;  %v2630_v15 = vshrl.u32 %v128_v11, 7  ;;  %v2062_v16 = vld [vmem:[#allocation2 + $0x150] ss:$8 sps:$4 sm:$0xff]   ;;  %vm936_vm0 = vcmask 850944  }
  0x72   :  { %v2063_v17 = vld [vmem:[#allocation2 + $0x164] ss:$8 sps:$4 sm:$0xff]   ;;  %v120_v19 = vld [vmem:[%s2708_s0] sm:$0xff]  ;;  %v2065_v21 = vld [vmem:[#allocation2 + $0x160] ss:$8 sps:$4 sm:$0xff]   ;;  %vm940_vm1 = vcmask 1043456  }
  0x73   :  { %991 = vmatpush1.bf16.msra.mxu0 %v2050_v3  ;;  %v127_v14 = vunpack.c.0.s8 %v126_v10  ;;  %v124_v20 = vcombine.high %v120_v19, %v120_v19  ;;  %v2066_v22 = vld [vmem:[#allocation2 + $0x174] ss:$8 sps:$4 sm:$0xff]   ;;  %v2068_v25 = vld [vmem:[#allocation2 + $0x170] ss:$8 sps:$4 sm:$0xff]   ;;  %v2069_v26 = vld [vmem:[#allocation2 + $0x184] ss:$8 sps:$4 sm:$0xff]  }
  0x74   :  { %992 = vmatprep.subr.bf16.mxu0 %v2051_v4  ;;  %v2071_v28 = vld [vmem:[#allocation2 + $0x180] ss:$8 sps:$4 sm:$0xff]   ;;  %v2072_v29 = vld [vmem:[#allocation2 + $0x194] ss:$8 sps:$4 sm:$0xff]   ;;  %v2074_v30 = vld [vmem:[#allocation2 + $0x190] ss:$8 sps:$4 sm:$0xff]  }
  0x75   :  { %v2633_v18 = vsub.s32 %v127_v14, %v2630_v15  ;;  %v2075_v31 = vld [vmem:[#allocation2 + $0x1a4] ss:$8 sps:$4 sm:$0xff]   ;;  %v2077_v32 = vld [vmem:[#allocation2 + $0x1a0] ss:$8 sps:$4 sm:$0xff]   ;;  %v2078_v33 = vld [vmem:[#allocation2 + $0x1b4] ss:$8 sps:$4 sm:$0xff]  }
  0x76   :  { %v2136_v34 = vld [vmem:[#allocation2 + $0x4] ss:$8 sps:$4 sm:$0xff]   ;;  %v2138_v35 = vld [vmem:[#allocation2] ss:$8 sps:$4 sm:$0xff]   ;;  %v2080_v36 = vld [vmem:[#allocation2 + $0x1b0] ss:$8 sps:$4 sm:$0xff]  }
  0x77   :  { %993 = vmatpush1.bf16.msra.mxu0 %v2053_v5  ;;  %v2639_v23 = vrot.slane %v124_v20, %v2633_v18  ;;  %v2081_v37 = vld [vmem:[#allocation2 + $0x1c4] ss:$8 sps:$4 sm:$0xff]   ;;  %947 = vmatprep.subr.bf16.mxu1 %v2136_v34  ;;  %v2142_v38 = vld [vmem:[#allocation2 + $0x14] ss:$8 sps:$4 sm:$0xff]   ;;  %v2144_v39 = vld [vmem:[#allocation2 + $0x10] ss:$8 sps:$4 sm:$0xff]   ;;  %v2644_v46 = vrot.slane %v120_v19, %v2633_v18 }
  0x78   :  { %994 = vmatprep.subr.bf16.mxu0 %v2054_v6  ;;  %948 = vmatpush1.bf16.msra.mxu1 %v2138_v35  ;;  %v2148_v40 = vld [vmem:[#allocation2 + $0x24] ss:$8 sps:$4 sm:$0xff]   ;;  %v2083_v41 = vld [vmem:[#allocation2 + $0x1c0] ss:$8 sps:$4 sm:$0xff]   ;;  %v2084_v42 = vld [vmem:[#allocation2 + $0x1d4] ss:$8 sps:$4 sm:$0xff]  }
  0x79   :  { %v140_v24 = vcombine.high %v2639_v23, %v2639_v23  ;;  %949 = vmatprep.subr.bf16.mxu1 %v2142_v38  ;;  %v2150_v43 = vld [vmem:[#allocation2 + $0x20] ss:$8 sps:$4 sm:$0xff]   ;;  %v2155_v44 = vld [vmem:[#allocation2 + $0x34] ss:$8 sps:$4 sm:$0xff]   ;;  %v2086_v45 = vld [vmem:[#allocation2 + $0x1d0] ss:$8 sps:$4 sm:$0xff]   ;;  %v139_v50 = vcombine.high %v2644_v46, %v2644_v46  ;;  %v168_v63 = vpack.c.bf16 %v2639_v23, %v2639_v23 }
  0x7a   :  { %v2087_v47 = vld [vmem:[#allocation2 + $0x1e4] ss:$8 sps:$4 sm:$0xff]   ;;  %v2649_v48 = vld [vmem:[%s2708_s0 + $0x8] sm:$0xff]  ;;  %v2089_v53 = vld [vmem:[#allocation2 + $0x1e0] ss:$8 sps:$4 sm:$0xff]   ;;  %vm2480_vm2 = vmmov 0  }
  0x7b   :  { %995 = vmatpush1.bf16.msra.mxu0 %v2056_v7  ;;  %v169_v27 = vpack.c.bf16 %v140_v24, %v140_v24  ;;  %v2157_v49 = vld [vmem:[#allocation2 + $0x30] ss:$8 sps:$4 sm:$0xff]   ;;  %v2161_v51 = vld [vmem:[#allocation2 + $0x44] ss:$8 sps:$4 sm:$0xff]   ;;  %v167_v52 = vpack.c.bf16 %v139_v50, %v139_v50  ;;  %v2655_v54 = vrot.slane %v2649_v48, %v2633_v18  ;;  %v2090_v55 = vld [vmem:[#allocation2 + $0x1f4] ss:$8 sps:$4 sm:$0xff]  }
  0x7c   :  { %996 = vmatprep.subr.bf16.mxu0 %v2057_v8  ;;  %950 = vmatpush1.bf16.msra.mxu1 %v2144_v39  ;;  %v2163_v56 = vld [vmem:[#allocation2 + $0x40] ss:$8 sps:$4 sm:$0xff]   ;;  %v2167_v57 = vld [vmem:[#allocation2 + $0x54] ss:$8 sps:$4 sm:$0xff]   ;;  %v2092_v58 = vld [vmem:[#allocation2 + $0x1f0] ss:$8 sps:$4 sm:$0xff]  }
  0x7d   :  { %1020 = vmatprep.mubr.bf16.mxu0 %v169_v27  ;;  %951 = vmatprep.subr.bf16.mxu1 %v2148_v40  ;;  %v156_v59 = vcombine.high %v2655_v54, %v2655_v54  ;;  %v2096_v60 = vld [vmem:[#allocation2 + $0x204] ss:$8 sps:$4 sm:$0xff]   ;;  %v2169_v61 = vld [vmem:[#allocation2 + $0x50] ss:$8 sps:$4 sm:$0xff]   ;;  %v2094_v0 = vld [vmem:[#allocation2 + $0x200] ss:$8 sps:$4 sm:$0xff]  }
  0x7e   :  { %979 = vmatprep.mubr.bf16.mxu1 %v167_v52  ;;  %v2173_v62 = vld [vmem:[#allocation2 + $0x64] ss:$8 sps:$4 sm:$0xff]   ;;  %v2099_v2 = vld [vmem:[#allocation2 + $0x214] ss:$8 sps:$4 sm:$0xff]   ;;  %v2175_v3 = vld [vmem:[#allocation2 + $0x60] ss:$8 sps:$4 sm:$0xff]  }
  0x7f   :  { %997 = vmatpush1.bf16.msra.mxu0 %v2059_v12  ;;  %v171_v1 = vpack.c.bf16 %v156_v59, %v156_v59  ;;  %v2179_v4 = vld [vmem:[#allocation2 + $0x74] ss:$8 sps:$4 sm:$0xff]   ;;  %v2097_v5 = vld [vmem:[#allocation2 + $0x210] ss:$8 sps:$4 sm:$0xff]   ;;  %v2102_v6 = vld [vmem:[#allocation2 + $0x224] ss:$8 sps:$4 sm:$0xff]  }
  0x80   :  { %998 = vmatprep.subr.bf16.mxu0 %v2060_v13  ;;  %952 = vmatpush1.bf16.msra.mxu1 %v2150_v43  ;;  %v2181_v7 = vld [vmem:[#allocation2 + $0x70] ss:$8 sps:$4 sm:$0xff]   ;;  %v2185_v8 = vld [vmem:[#allocation2 + $0x84] ss:$8 sps:$4 sm:$0xff]   ;;  %v2100_v9 = vld [vmem:[#allocation2 + $0x220] ss:$8 sps:$4 sm:$0xff]  }
  0x81   :  { %953 = vmatprep.subr.bf16.mxu1 %v2155_v44  ;;  %v2105_v10 = vld [vmem:[#allocation2 + $0x234] ss:$8 sps:$4 sm:$0xff]   ;;  %v2187_v11 = vld [vmem:[#allocation2 + $0x80] ss:$8 sps:$4 sm:$0xff]   ;;  %v2103_v13 = vld [vmem:[#allocation2 + $0x230] ss:$8 sps:$4 sm:$0xff]  }
  0x82   :  { %v2191_v12 = vld [vmem:[#allocation2 + $0x94] ss:$8 sps:$4 sm:$0xff]   ;;  %v2108_v14 = vld [vmem:[#allocation2 + $0x244] ss:$8 sps:$4 sm:$0xff]   ;;  %v2106_v19 = vld [vmem:[#allocation2 + $0x240] ss:$8 sps:$4 sm:$0xff]  }
  0x83   :  { %999 = vmatpush1.bf16.msra.mxu0 %v2062_v16  ;;  %v2193_v16 = vld [vmem:[#allocation2 + $0x90] ss:$8 sps:$4 sm:$0xff]   ;;  %v2111_v20 = vld [vmem:[#allocation2 + $0x254] ss:$8 sps:$4 sm:$0xff]   ;;  %v2114_v24 = vld [vmem:[#allocation2 + $0x264] ss:$8 sps:$4 sm:$0xff]  }
  0x84   :  { %1000 = vmatprep.subr.bf16.mxu0 %v2063_v17  ;;  %954 = vmatpush1.bf16.msra.mxu1 %v2157_v49  ;;  %v2197_v17 = vld [vmem:[#allocation2 + $0xa4] ss:$8 sps:$4 sm:$0xff]   ;;  %v2109_v23 = vld [vmem:[#allocation2 + $0x250] ss:$8 sps:$4 sm:$0xff]   ;;  %v2112_v27 = vld [vmem:[#allocation2 + $0x260] ss:$8 sps:$4 sm:$0xff]  }
  0x85   :  { %955 = vmatprep.subr.bf16.mxu1 %v2161_v51  ;;  %v2118_v34 = vld [vmem:[#allocation2 + $0x280] ss:$8 sps:$4 sm:$0xff]   ;;  %v2221_v35 = vld [vmem:[#allocation2 + $0xe4] ss:$8 sps:$4 sm:$0xff]   ;;  %v2227_v38 = vld [vmem:[#allocation2 + $0xf4] ss:$8 sps:$4 sm:$0xff]  }
  0x86   :  { %v2121_v39 = vld [vmem:[#allocation2 + $0x290] ss:$8 sps:$4 sm:$0xff]   ;;  %v2126_v40 = vld [vmem:[#allocation2 + $0x2a4] ss:$8 sps:$4 sm:$0xff]   ;;  %v2124_v43 = vld [vmem:[#allocation2 + $0x2a0] ss:$8 sps:$4 sm:$0xff]  }
  0x87   :  { %1001 = vmatpush1.bf16.msra.mxu0 %v2065_v21  ;;  %v2199_v21 = vld [vmem:[#allocation2 + $0xa0] ss:$8 sps:$4 sm:$0xff]   ;;  %v2129_v44 = vld [vmem:[#allocation2 + $0x2b4] ss:$8 sps:$4 sm:$0xff]   ;;  %v2127_v50 = vld [vmem:[#allocation2 + $0x2b0] ss:$8 sps:$4 sm:$0xff]  }
  0x88   :  { %1002 = vmatprep.subr.bf16.mxu0 %v2066_v22  ;;  %956 = vmatpush1.bf16.msra.mxu1 %v2163_v56  ;;  %v2203_v22 = vld [vmem:[#allocation2 + $0xb4] ss:$8 sps:$4 sm:$0xff]   ;;  %v2132_v51 = vld [vmem:[#allocation2 + $0x2c4] ss:$8 sps:$4 sm:$0xff]  }
  0x89   :  { %957 = vmatprep.subr.bf16.mxu1 %v2167_v57  ;;  %v2237_v49 = vld [vmem:[#allocation7 + $0x48] sm:$0xff]   ;;  %v2240_v57 = vld [vmem:[#allocation7 + $0x10] sm:$0xff]   ;;  %v2141_v59 = vld [vmem:[#allocation2 + $0x2e4] ss:$8 sps:$4 sm:$0xff]  }
  0x8a   :  { %v2238_v52 = vld [vmem:[#allocation7 + $0x8] sm:$0xff]  }
  0x8b   :  { %1003 = vmatpush1.bf16.msra.mxu0 %v2068_v25  ;;  %v2205_v25 = vld [vmem:[#allocation2 + $0xb0] ss:$8 sps:$4 sm:$0xff]   ;;  %v2135_v56 = vld [vmem:[#allocation2 + $0x2d4] ss:$8 sps:$4 sm:$0xff]  }
  0x8c   :  { %1004 = vmatprep.subr.bf16.mxu0 %v2069_v26  ;;  %958 = vmatpush1.bf16.msra.mxu1 %v2169_v61  ;;  %v2209_v26 = vld [vmem:[#allocation2 + $0xc4] ss:$8 sps:$4 sm:$0xff]   ;;  %v141_v61 = vcombine.high %v2649_v48, %v2649_v48 }
  0x8d   :  { %959 = vmatprep.subr.bf16.mxu1 %v2173_v62  ;;  %v2243_v62 = vld [vmem:[#allocation7 + $0x60] sm:$0xff]  }
  0x8e   :  { %v2154_v48 = vld [vmem:[#allocation2 + $0x304] ss:$8 sps:$4 sm:$0xff]  }
  0x8f   :  { %1005 = vmatpush1.bf16.msra.mxu0 %v2071_v28  ;;  %v2117_v28 = vld [vmem:[#allocation2 + $0x274] ss:$8 sps:$4 sm:$0xff]  }
  0x90   :  { %1006 = vmatprep.subr.bf16.mxu0 %v2072_v29  ;;  %960 = vmatpush1.bf16.msra.mxu1 %v2175_v3  ;;  %v2211_v29 = vld [vmem:[#allocation2 + $0xc0] ss:$8 sps:$4 sm:$0xff]   ;;  %v2145_v3 = vld [vmem:[#allocation2 + $0x2f0] ss:$8 sps:$4 sm:$0xff]  }
  0x91   :  { %961 = vmatprep.subr.bf16.mxu1 %v2179_v4 }
  0x93   :  { %1007 = vmatpush1.bf16.msra.mxu0 %v2074_v30  ;;  %v2215_v30 = vld [vmem:[#allocation2 + $0xd4] ss:$8 sps:$4 sm:$0xff]  }
  0x94   :  { %1008 = vmatprep.subr.bf16.mxu0 %v2075_v31  ;;  %962 = vmatpush1.bf16.msra.mxu1 %v2181_v7  ;;  %v2115_v31 = vld [vmem:[#allocation2 + $0x270] ss:$8 sps:$4 sm:$0xff]   ;;  %v2160_v7 = vld [vmem:[#allocation2 + $0x314] ss:$8 sps:$4 sm:$0xff]  }
  0x95   :  { %963 = vmatprep.subr.bf16.mxu1 %v2185_v8  ;;  %v2158_v8 = vld [vmem:[#allocation2 + $0x310] ss:$8 sps:$4 sm:$0xff]  }
  0x97   :  { %1009 = vmatpush1.bf16.msra.mxu0 %v2077_v32  ;;  %v2120_v32 = vld [vmem:[#allocation2 + $0x284] ss:$8 sps:$4 sm:$0xff]  }
  0x98   :  { %1010 = vmatprep.subr.bf16.mxu0 %v2078_v33  ;;  %964 = vmatpush1.bf16.msra.mxu1 %v2187_v11  ;;  %v2217_v33 = vld [vmem:[#allocation2 + $0xd0] ss:$8 sps:$4 sm:$0xff]   ;;  %v2172_v11 = vld [vmem:[#allocation2 + $0x334] ss:$8 sps:$4 sm:$0xff]  }
  0x99   :  { %965 = vmatprep.subr.bf16.mxu1 %v2191_v12  ;;  %v2170_v12 = vld [vmem:[#allocation2 + $0x330] ss:$8 sps:$4 sm:$0xff]  }
  0x9b   :  { %1011 = vmatpush1.bf16.msra.mxu0 %v2080_v36  ;;  %v2123_v36 = vld [vmem:[#allocation2 + $0x294] ss:$8 sps:$4 sm:$0xff]  }
  0x9c   :  { %1012 = vmatprep.subr.bf16.mxu0 %v2081_v37  ;;  %966 = vmatpush1.bf16.msra.mxu1 %v2193_v16  ;;  %v2223_v37 = vld [vmem:[#allocation2 + $0xe0] ss:$8 sps:$4 sm:$0xff]   ;;  %v2182_v16 = vld [vmem:[#allocation2 + $0x350] ss:$8 sps:$4 sm:$0xff]  }
  0x9d   :  { %967 = vmatprep.subr.bf16.mxu1 %v2197_v17  ;;  %v2190_v17 = vld [vmem:[#allocation2 + $0x364] ss:$8 sps:$4 sm:$0xff]  }
  0x9f   :  { %1013 = vmatpush1.bf16.msra.mxu0 %v2083_v41  ;;  %v2229_v41 = vld [vmem:[#allocation2 + $0xf0] ss:$8 sps:$4 sm:$0xff]  }
  0xa0   :  { %1014 = vmatprep.subr.bf16.mxu0 %v2084_v42  ;;  %968 = vmatpush1.bf16.msra.mxu1 %v2199_v21  ;;  %v2235_v42 = vld [vmem:[#allocation7 + $0x40] sm:$0xff]  }
  0xa1   :  { %969 = vmatprep.subr.bf16.mxu1 %v2203_v22  ;;  %v2194_v21 = vld [vmem:[#allocation2 + $0x370] ss:$8 sps:$4 sm:$0xff]   ;;  %v2202_v22 = vld [vmem:[#allocation2 + $0x384] ss:$8 sps:$4 sm:$0xff]  }
  0xa3   :  { %1015 = vmatpush1.bf16.msra.mxu0 %v2086_v45  ;;  %v2236_v45 = vld [vmem:[#allocation7] sm:$0xff]  }
  0xa4   :  { %1016 = vmatprep.subr.bf16.mxu0 %v2087_v47  ;;  %970 = vmatpush1.bf16.msra.mxu1 %v2205_v25  ;;  %v166_v47 = vpack.c.bf16 %v2644_v46, %v2644_v46  ;;  %v2133_v46 = vld [vmem:[#allocation2 + $0x2d0] ss:$8 sps:$4 sm:$0xff]  }
  0xa5   :  { %971 = vmatprep.subr.bf16.mxu1 %v2209_v26  ;;  %v2206_v25 = vld [vmem:[#allocation2 + $0x390] ss:$8 sps:$4 sm:$0xff]   ;;  %v2214_v26 = vld [vmem:[#allocation2 + $0x3a4] ss:$8 sps:$4 sm:$0xff]  }
  0xa7   :  { %1017 = vmatpush1.bf16.msra.mxu0 %v2089_v53  ;;  %v2239_v53 = vld [vmem:[#allocation7 + $0x50] sm:$0xff]  }
  0xa8   :  { %1018 = vmatprep.subr.bf16.mxu0 %v2090_v55  ;;  %972 = vmatpush1.bf16.msra.mxu1 %v2211_v29  ;;  %v2130_v55 = vld [vmem:[#allocation2 + $0x2c0] ss:$8 sps:$4 sm:$0xff]   ;;  %v2218_v29 = vld [vmem:[#allocation2 + $0x3b0] ss:$8 sps:$4 sm:$0xff]  }
  0xa9   :  { %973 = vmatprep.subr.bf16.mxu1 %v2215_v30  ;;  %v2226_v30 = vld [vmem:[#allocation2 + $0x3c4] ss:$8 sps:$4 sm:$0xff]  }
  0xab   :  { %1019 = vmatpush1.bf16.msra.mxu0 %v2092_v58  ;;  %v2241_v58 = vld [vmem:[#allocation7 + $0x58] sm:$0xff]  }
  0xac   :  { %1029 = vmatprep.subr.bf16.mxu0 %v2096_v60  ;;  %974 = vmatpush1.bf16.msra.mxu1 %v2217_v33  ;;  %v2242_v60 = vld [vmem:[#allocation7 + $0x18] sm:$0xff]  }
  0xad   :  { %975 = vmatprep.subr.bf16.mxu1 %v2221_v35  ;;  %v298_v33 = vld [vmem:[#allocation2 + $0x3e0] sm:$0xff] }
  0xae   :  { %1021 = vmatmul.mubr.bf16.vlgmr.msra.gmra.mrb[0].mxu0 %v168_v63  ;;  %v2139_v63 = vld [vmem:[#allocation2 + $0x2e0] ss:$8 sps:$4 sm:$0xff]   ;;  %v1883_v35 = vcombine.high %v298_v33, %v298_v33 }
  0xaf   :  { %1030 = vmatpush1.bf16.msra.mxu0 %v2094_v0  ;;  %1061 = vmatprep.mubr.bf16.mxu0 %v171_v1  ;;  %v2666_v0 = vrot.slane %v141_v61, %v2633_v18  ;;  %v2147_v1 = vld [vmem:[#allocation2 + $0x2f4] ss:$8 sps:$4 sm:$0xff]  }
  0xb0   :  { %1031 = vmatprep.subr.bf16.mxu0 %v2099_v2  ;;  %976 = vmatpush1.bf16.msra.mxu1 %v2223_v37  ;;  %v2244_v2 = vld [vmem:[#allocation7 + $0x20] sm:$0xff]  }
  0xb1   :  { %977 = vmatprep.subr.bf16.mxu1 %v2227_v38  ;;  %v157_v4 = vcombine.high %v2666_v0, %v2666_v0  ;;  %v172_v38 = vpack.c.bf16 %v2666_v0, %v2666_v0 }
  0xb3   :  { %1032 = vmatpush1.bf16.msra.mxu0 %v2097_v5  ;;  %v170_v5 = vpack.c.bf16 %v2655_v54, %v2655_v54  ;;  %v173_v18 = vpack.c.bf16 %v157_v4, %v157_v4  ;;  %v2178_v54 = vld [vmem:[#allocation2 + $0x344] ss:$8 sps:$4 sm:$0xff]  }
  0xb4   :  { %1033 = vmatprep.subr.bf16.mxu0 %v2102_v6  ;;  %978 = vmatpush1.bf16.msra.mxu1 %v2229_v41  ;;  %v2152_v6 = vld [vmem:[#allocation2 + $0x300] ss:$8 sps:$4 sm:$0xff]  }
  0xb5   :  { %1945 = vmatprep.subr.bf16.mxu1 %v2235_v42  ;;  %v2247_v41 = vld [vmem:[#allocation7 + $0x70] sm:$0xff]   ;;  %v2251_v4 = vld [vmem:[#allocation8] ss:$8 sps:$4 sm:$0xff]  }
  0xb6   :  { %v2248_v42 = vld [vmem:[#allocation7 + $0x30] sm:$0xff]  }
  0xb7   :  { %1034 = vmatpush1.bf16.msra.mxu0 %v2100_v9  ;;  %980 = vmatmul.mubr.bf16.vlgmr.msra.gmra.mrb[0].mxu1 %v166_v47  ;;  %v2166_v9 = vld [vmem:[#allocation2 + $0x324] ss:$8 sps:$4 sm:$0xff]  }
  0xb8   :  { %1035 = vmatprep.subr.bf16.mxu0 %v2105_v10  ;;  %1946 = vmatpush3.bf16.msra.mxu1 %v2236_v45  ;;  %v2164_v10 = vld [vmem:[#allocation2 + $0x320] ss:$8 sps:$4 sm:$0xff]   ;;  %v2253_v45 = vld [vmem:[#allocation8 + $0x4] ss:$8 sps:$4 sm:$0xff]  }
  0xb9   :  { %1947 = vmatprep.subr.bf16.mxu1 %v2237_v49 }
  0xbb   :  { %1036 = vmatpush1.bf16.msra.mxu0 %v2103_v13  ;;  %v2176_v13 = vld [vmem:[#allocation2 + $0x340] ss:$8 sps:$4 sm:$0xff]  }
  0xbc   :  { %1037 = vmatprep.subr.bf16.mxu0 %v2108_v14  ;;  %1948 = vmatpush3.bf16.msra.mxu1 %v2238_v52  ;;  %v2184_v14 = vld [vmem:[#allocation2 + $0x354] ss:$8 sps:$4 sm:$0xff]   ;;  %v303_v52 = vsub.s32 0, %v2630_v15 }
  0xbd   :  { %1949 = vmatprep.subr.bf16.mxu1 %v2239_v53  ;;  %v299_v53 = vld [vmem:[#allocation5] sm:$0x3] }
  0xbf   :  { %1038 = vmatpush1.bf16.msra.mxu0 %v2106_v19  ;;  %v2188_v19 = vld [vmem:[#allocation2 + $0x360] ss:$8 sps:$4 sm:$0xff]  }
  0xc0   :  { %1039 = vmatprep.subr.bf16.mxu0 %v2111_v20  ;;  %1950 = vmatpush3.bf16.msra.mxu1 %v2240_v57  ;;  %v2196_v20 = vld [vmem:[#allocation2 + $0x374] ss:$8 sps:$4 sm:$0xff]  }
  0xc1   :  { %1951 = vmatprep.subr.bf16.mxu1 %v2241_v58 }
  0xc3   :  { %1040 = vmatpush1.bf16.msra.mxu0 %v2109_v23  ;;  %v2200_v23 = vld [vmem:[#allocation2 + $0x380] ss:$8 sps:$4 sm:$0xff]  }
  0xc4   :  { %1041 = vmatprep.subr.bf16.mxu0 %v2114_v24  ;;  %1952 = vmatpush3.bf16.msra.mxu1 %v2242_v60  ;;  %v2208_v24 = vld [vmem:[#allocation2 + $0x394] ss:$8 sps:$4 sm:$0xff]  }
  0xc5   :  { %1953 = vmatprep.subr.bf16.mxu1 %v2243_v62 }
  0xc7   :  { %1042 = vmatpush1.bf16.msra.mxu0 %v2112_v27  ;;  %v2212_v27 = vld [vmem:[#allocation2 + $0x3a0] ss:$8 sps:$4 sm:$0xff]  }
  0xc8   :  { %1043 = vmatprep.subr.bf16.mxu0 %v2117_v28  ;;  %1954 = vmatpush3.bf16.msra.mxu1 %v2244_v2  ;;  %v2220_v28 = vld [vmem:[#allocation2 + $0x3b4] ss:$8 sps:$4 sm:$0xff]  }
  0xcb   :  { %1044 = vmatpush1.bf16.msra.mxu0 %v2115_v31  ;;  %v2224_v31 = vld [vmem:[#allocation2 + $0x3c0] ss:$8 sps:$4 sm:$0xff]  }
  0xcc   :  { %1045 = vmatprep.subr.bf16.mxu0 %v2120_v32  ;;  %v2232_v32 = vld [vmem:[#allocation2 + $0x3d4] ss:$8 sps:$4 sm:$0xff]  }
  0xcf   :  { %1046 = vmatpush1.bf16.msra.mxu0 %v2118_v34  ;;  %v2230_v34 = vld [vmem:[#allocation2 + $0x3d0] ss:$8 sps:$4 sm:$0xff]  }
  0xd0   :  { %1047 = vmatprep.subr.bf16.mxu0 %v2123_v36  ;;  %v1882_v36 = vcombine.low %v298_v33, %v298_v33  ;;  %v2279_v33 = vld [vmem:[#allocation10 + $0x50] sm:$0xff]  }
  0xd2   :  { %v942_v37 = vsel %vm940_vm1, %v1882_v36, 0  ;;  %v2282_v36 = vld [vmem:[#allocation10 + $0x18] sm:$0xff]  }
  0xd3   :  { %1048 = vmatpush1.bf16.msra.mxu0 %v2121_v39  ;;  %v2245_v39 = vld [vmem:[#allocation7 + $0x68] sm:$0xff]  }
  0xd4   :  { %1049 = vmatprep.subr.bf16.mxu0 %v2126_v40  ;;  %v2246_v40 = vld [vmem:[#allocation7 + $0x28] sm:$0xff]   ;;  %1955 = vmatprep.subr.bf16.mxu1 %v2245_v39 }
  0xd5   :  { %1956 = vmatpush3.bf16.msra.mxu1 %v2246_v40  ;;  %v2285_v39 = vld [vmem:[#allocation10 + $0x68] sm:$0xff]  }
  0xd6   :  { %1957 = vmatprep.subr.bf16.mxu1 %v2247_v41  ;;  %v2286_v40 = vld [vmem:[#allocation10 + $0x28] sm:$0xff]   ;;  %v2287_v41 = vld [vmem:[#allocation10 + $0x70] sm:$0xff]  }
  0xd7   :  { %1050 = vmatpush1.bf16.msra.mxu0 %v2124_v43  ;;  %v2249_v43 = vld [vmem:[#allocation7 + $0x78] sm:$0xff]  }
  0xd8   :  { %1051 = vmatprep.subr.bf16.mxu0 %v2129_v44  ;;  %v2250_v44 = vld [vmem:[#allocation7 + $0x38] sm:$0xff]  }
  0xd9   :  { %1958 = vmatpush3.bf16.msra.mxu1 %v2248_v42  ;;  %v2288_v42 = vld [vmem:[#allocation10 + $0x30] sm:$0xff]  }
  0xda   :  { %1959 = vmatprep.subr.bf16.mxu1 %v2249_v43  ;;  %v2289_v43 = vld [vmem:[#allocation10 + $0x78] sm:$0xff]  }
  0xdb   :  { %1052 = vmatpush1.bf16.msra.mxu0 %v2127_v50 }
  0xdc   :  { %1053 = vmatprep.subr.bf16.mxu0 %v2132_v51 }
  0xdd   :  { %1960 = vmatpush3.bf16.msra.mxu1 %v2250_v44  ;;  %v2290_v44 = vld [vmem:[#allocation10 + $0x38] sm:$0xff]  }
  0xde   :  { %1400 = vmatprep.subr.bf16.mxu1 %v2253_v45  ;;  %v2479_v45 = vmov 0.0  }
  0xdf   :  { %1054 = vmatpush1.bf16.msra.mxu0 %v2130_v55  ;;  %v307_v55 = vsub.s32 1, %v2630_v15  ;;  %v2294_v15 = vld [vmem:[#allocation11 + $0x18] sm:$0xff]  }
  0xe0   :  { %1055 = vmatprep.subr.bf16.mxu0 %v2135_v56  ;;  %v304_v56 = vrot.slane %v299_v53, %v303_v52 }
  0xe1   :  { %v308_v57 = vrot.slane %v299_v53, %v307_v55 }
  0xe3   :  { %1056 = vmatpush1.bf16.msra.mxu0 %v2133_v46 }
  0xe4   :  { %1057 = vmatprep.subr.bf16.mxu0 %v2141_v59 }
  0xe7   :  { %1058 = vmatpush1.bf16.msra.mxu0 %v2139_v63 }
  0xe8   :  { %1059 = vmatprep.subr.bf16.mxu0 %v2147_v1 }
  0xeb   :  { %1060 = vmatpush1.bf16.msra.mxu0 %v2145_v3 }
  0xec   :  { %1070 = vmatprep.subr.bf16.mxu0 %v2154_v48 }
  0xee   :  { %1062 = vmatmul.mubr.bf16.vlgmr.msra.gmra.mrb[0].mxu0 %v170_v5  ;;  %v2256_v5 = vld [vmem:[#allocation8 + $0x14] ss:$8 sps:$4 sm:$0xff]  }
  0xef   :  { %1071 = vmatpush1.bf16.msra.mxu0 %v2152_v6  ;;  %1885 = vmatprep.mubr.msk.bf16.mxu0 %vm936_vm0, %v173_v18  ;;  %v2254_v6 = vld [vmem:[#allocation8 + $0x10] ss:$8 sps:$4 sm:$0xff]   ;;  %v2259_v18 = vld [vmem:[#allocation8 + $0x24] ss:$8 sps:$4 sm:$0xff]  }
  0xf0   :  { %1072 = vmatprep.subr.bf16.mxu0 %v2160_v7  ;;  %v2257_v7 = vld [vmem:[#allocation8 + $0x20] ss:$8 sps:$4 sm:$0xff]  }
  0xf3   :  { %1073 = vmatpush1.bf16.msra.mxu0 %v2158_v8  ;;  %v2262_v8 = vld [vmem:[#allocation8 + $0x34] ss:$8 sps:$4 sm:$0xff]  }
  0xf4   :  { %1074 = vmatprep.subr.bf16.mxu0 %v2166_v9  ;;  %v2260_v9 = vld [vmem:[#allocation8 + $0x30] ss:$8 sps:$4 sm:$0xff]  }
  0xf7   :  { %1075 = vmatpush1.bf16.msra.mxu0 %v2164_v10  ;;  %v2265_v10 = vld [vmem:[#allocation8 + $0x44] ss:$8 sps:$4 sm:$0xff]  }
  0xf8   :  { %1076 = vmatprep.subr.bf16.mxu0 %v2172_v11  ;;  %v2263_v11 = vld [vmem:[#allocation8 + $0x40] ss:$8 sps:$4 sm:$0xff]  }
  0xfb   :  { %1077 = vmatpush1.bf16.msra.mxu0 %v2170_v12  ;;  %v2268_v12 = vld [vmem:[#allocation8 + $0x54] ss:$8 sps:$4 sm:$0xff]  }
  0xfc   :  { %1078 = vmatprep.subr.bf16.mxu0 %v2178_v54  ;;  %v2266_v54 = vld [vmem:[#allocation8 + $0x50] ss:$8 sps:$4 sm:$0xff]  }
  0xff   :  { %1079 = vmatpush1.bf16.msra.mxu0 %v2176_v13  ;;  %v2271_v13 = vld [vmem:[#allocation8 + $0x64] ss:$8 sps:$4 sm:$0xff]  }
 0x100   :  { %1080 = vmatprep.subr.bf16.mxu0 %v2184_v14  ;;  %v2269_v14 = vld [vmem:[#allocation8 + $0x60] ss:$8 sps:$4 sm:$0xff]  }
 0x103   :  { %1081 = vmatpush1.bf16.msra.mxu0 %v2182_v16  ;;  %v2274_v16 = vld [vmem:[#allocation8 + $0x74] ss:$8 sps:$4 sm:$0xff]  }
 0x104   :  { %1082 = vmatprep.subr.bf16.mxu0 %v2190_v17  ;;  %v2272_v17 = vld [vmem:[#allocation8 + $0x70] ss:$8 sps:$4 sm:$0xff]  }
 0x107   :  { %1083 = vmatpush1.bf16.msra.mxu0 %v2188_v19  ;;  %v2478_v19 = vmov 0  }
 0x108   :  { %1084 = vmatprep.subr.bf16.mxu0 %v2196_v20  ;;  %v2275_v20 = vld [vmem:[#allocation10 + $0x40] sm:$0xff]  }
 0x10b   :  { %1085 = vmatpush1.bf16.msra.mxu0 %v2194_v21 }
 0x10c   :  { %1086 = vmatprep.subr.bf16.mxu0 %v2202_v22  ;;  %v1886_v22 = vld [vmem:[%s2712_s4] ss:$0 sm:$0xff] }
 0x10f   :  { %1087 = vmatpush1.bf16.msra.mxu0 %v2200_v23 }
 0x110   :  { %1088 = vmatprep.subr.bf16.mxu0 %v2208_v24 }
 0x113   :  { %1089 = vmatpush1.bf16.msra.mxu0 %v2206_v25 }
 0x114   :  { %1090 = vmatprep.subr.bf16.mxu0 %v2214_v26 }
 0x117   :  { %1091 = vmatpush1.bf16.msra.mxu0 %v2212_v27 }
 0x118   :  { %1092 = vmatprep.subr.bf16.mxu0 %v2220_v28 }
 0x11b   :  { %1093 = vmatpush1.bf16.msra.mxu0 %v2218_v29  ;;  %v2276_v29 = vld [vmem:[#allocation10] sm:$0xff]  }
 0x11c   :  { %1094 = vmatprep.subr.bf16.mxu0 %v2226_v30 }
 0x11f   :  { %1095 = vmatpush1.bf16.msra.mxu0 %v2224_v31  ;;  %v2277_v31 = vld [vmem:[#allocation10 + $0x48] sm:$0xff]  }
 0x120   :  { %1096 = vmatprep.subr.bf16.mxu0 %v2232_v32  ;;  %v2278_v32 = vld [vmem:[#allocation10 + $0x8] sm:$0xff]  }
 0x123   :  { %1097 = vmatpush1.bf16.msra.mxu0 %v2230_v34  ;;  %v2280_v34 = vld [vmem:[#allocation10 + $0x10] sm:$0xff]  }
 0x124   :  { %1884 = vmatprep.subr.msk.bf16.mxu0 %vm940_vm1, %v1883_v35  ;;  %v2281_v35 = vld [vmem:[#allocation10 + $0x58] sm:$0xff]  }
 0x127   :  { %1099 = vmatpush1.bf16.msra.mxu0 %v942_v37  ;;  %v2283_v37 = vld [vmem:[#allocation10 + $0x60] sm:$0xff]  }
 0x12a   :  { %1103 = vmatmul.mubr.bf16.vlgmr.msra.gmra.mrb[0].mxu0 %v172_v38  ;;  %v2284_v38 = vld [vmem:[#allocation10 + $0x20] sm:$0xff]  }
 0x18a   :  { %v981_v47 = vpop.f32.mrb[0].mxu1 }
 0x18b   :  { %v983_v49 = vpop.f32.mrb[1].mxu1  ;;  %v982_v58 = vadd.f32 %v981_v47, %v304_v56  ;;  %v1308_v47 = vld [vmem:[%s2714_s6] sm:$0x3] }
 0x18c   :  { %v985_v50 = vpop.f32.mrb[2].mxu1  ;;  %v984_v46 = vadd.f32 %v983_v49, %v308_v57  ;;  %v1313_v49 = vrot.slane %v1308_v47, %v303_v52  ;;  %v2293_v52 = vld [vmem:[#allocation11 + $0x10] sm:$0xff]  }
 0x18d   :  { %v986_v51 = vpop.f32.mrb[3].mxu1  ;;  %v1317_v50 = vrot.slane %v1308_v47, %v307_v55  ;;  %v2295_v55 = vld [vmem:[#allocation11 + $0x20] sm:$0xff]  }
 0x1fd   :  { %v1104_v59 = vpop.f32.mrb[0].mxu0 }
 0x1fe   :  { %v2019_v60 = vadd.f32 %v1104_v59, %v982_v58  ;;  %v1106_v61 = vpop.f32.mrb[1].mxu0 }
 0x1ff   :  { %v2021_v62 = vadd.f32 %v1106_v61, %v984_v46  ;;  %v1108_v63 = vpop.f32.mrb[2].mxu0 }
 0x200   :  { %v1111_v0 = vmax.f32 %v2019_v60, 0.0  ;;  %v1109_v1 = vpop.f32.mrb[3].mxu0 }
 0x201   :  { %v1112_v2 = vmax.f32 %v2021_v62, 0.0  ;;  %v2291_v62 = vld [vmem:[#allocation11] sm:$0xff]   ;;  %v2296_v1 = vld [vmem:[#allocation11 + $0x28] sm:$0xff]  }
 0x202   :  { %v1113_v48 = vpack.c.bf16 %v1111_v0, %v1111_v0  ;;  %v2292_v0 = vld [vmem:[#allocation11 + $0x8] sm:$0xff]  }
 0x203   :  { %v1114_v3 = vpack.c.bf16 %v1112_v2, %v1112_v2  ;;  %v2297_v2 = vld [vmem:[#allocation11 + $0x30] sm:$0xff]  }
 0x205   :  { %1282 = vmatprep.mubr.bf16.mxu1 %v1114_v3  ;;  %v2298_v3 = vld [vmem:[#allocation11 + $0x38] sm:$0xff]  }
 0x206   :  { %1283 = vmatmul.mubr.bf16.vlgmr.msra.gmra.mrb[4].mxu1 %v1113_v48  ;;  %v1919_v48 = vld [vmem:[%s2716_s8] ss:$0 sm:$0xff]  ;;  %s2481_s8 = smov [#allocation13]  }
 0x207   :  { %1401 = vmatpush1.bf16.msra.mxu1 %v2251_v4  ;;  %1432 = vmatprep.mubr.bf16.mxu1 %v2478_v19  ;;  %s1746_s16 = sshll.u32 %s2481_s8, 4  ;;  %s1747_s16 = int_to_ptr.vmem [resolvable:$true] %s1746_s16 }
 0x208   :  { %1402 = vmatprep.subr.bf16.mxu1 %v2256_v5  ;;  %s2435_s19 = scalar_lea.vmem %s1747_s16, 32  ;;  %p2440_p7 = scmp.lt.s32.totalorder %s1747_s16, %s1747_s16 }
 0x209   :  { %p2436_p6 = scmp.ne.s32.totalorder %s1747_s16, %s2435_s19  ;;  %p2441_p8 = scmp.lt.s32.totalorder %s2435_s19, %s2435_s19 }
 0x20b   :  { %1403 = vmatpush1.bf16.msra.mxu1 %v2254_v6  ;;  %p2442_p9 = por %p2441_p8, %p2440_p7 }
 0x20c   :  { %1404 = vmatprep.subr.bf16.mxu1 %v2259_v18 }
 0x20d   :  { %p2443_p10 = pnand %p2442_p9, %p2436_p6 }
 0x20f   :  { %1405 = vmatpush1.bf16.msra.mxu1 %v2257_v7 }
 0x210   :  { %1406 = vmatprep.subr.bf16.mxu1 %v2262_v8 }
 0x213   :  { %1407 = vmatpush1.bf16.msra.mxu1 %v2260_v9 }
 0x214   :  { %1408 = vmatprep.subr.bf16.mxu1 %v2265_v10 }
 0x217   :  { %1409 = vmatpush1.bf16.msra.mxu1 %v2263_v11  ;;  %v1936_v11 = vld [vmem:[%s2718_s10] ss:$0 sm:$0xff] }
 0x218   :  { %1410 = vmatprep.subr.bf16.mxu1 %v2268_v12 }
 0x21b   :  { %1411 = vmatpush1.bf16.msra.mxu1 %v2266_v54 }
 0x21c   :  { %1412 = vmatprep.subr.bf16.mxu1 %v2271_v13 }
 0x21f   :  { %1413 = vmatpush1.bf16.msra.mxu1 %v2269_v14 }
 0x220   :  { %1414 = vmatprep.subr.bf16.mxu1 %v2274_v16 }
 0x223   :  { %1415 = vmatpush1.bf16.msra.mxu1 %v2272_v17 }
 0x224   :  { %1967 = vmatprep.subr.bf16.mxu1 %v2275_v20 }
 0x2d9   :  { %v1961_v21 = vpop.f32.mrb[4].mxu1 }
 0x2da   :  { %v1962_v23 = vpop.f32.mrb[5].mxu1 }
 0x2db   :  { %v1963_v24 = vadd.f32 %v1962_v23, %v1961_v21  ;;  %v1964_v25 = vpop.f32.mrb[6].mxu1 }
 0x2dc   :  { %v1965_v26 = vpop.f32.mrb[7].mxu1 }
 0x2dd   :  { %v1285_v27 = vadd.f32 %v1963_v24, %v1886_v22 }
 0x2df   :  { %v1290_v28 = vmax.f32 %v1285_v27, 0.0 }
 0x2e1   :  { %v1291_v30 = vpack.c.bf16 %v1290_v28, %v1290_v28 }
 0x2e3   :  { %1433 = vmatmul.mubr.bf16.vlgmr.msra.gmra.mrb[8].mxu1 %v1291_v30 }
 0x2e4   :  { %1968 = vmatpush3.bf16.msra.mxu1 %v2276_v29 }
 0x2e5   :  { %1969 = vmatprep.subr.bf16.mxu1 %v2277_v31 }
 0x2e8   :  { %1970 = vmatpush3.bf16.msra.mxu1 %v2278_v32 }
 0x2e9   :  { %1971 = vmatprep.subr.bf16.mxu1 %v2279_v33 }
 0x2ec   :  { %1972 = vmatpush3.bf16.msra.mxu1 %v2280_v34 }
 0x2ed   :  { %1973 = vmatprep.subr.bf16.mxu1 %v2281_v35 }
 0x2f0   :  { %1974 = vmatpush3.bf16.msra.mxu1 %v2282_v36 }
 0x2f1   :  { %1975 = vmatprep.subr.bf16.mxu1 %v2283_v37 }
 0x2f4   :  { %1976 = vmatpush3.bf16.msra.mxu1 %v2284_v38 }
 0x2f5   :  { %1977 = vmatprep.subr.bf16.mxu1 %v2285_v39 }
 0x2f8   :  { %1978 = vmatpush3.bf16.msra.mxu1 %v2286_v40 }
 0x2f9   :  { %1979 = vmatprep.subr.bf16.mxu1 %v2287_v41 }
 0x2fc   :  { %1980 = vmatpush3.bf16.msra.mxu1 %v2288_v42 }
 0x2fd   :  { %1981 = vmatprep.subr.bf16.mxu1 %v2289_v43 }
 0x300   :  { %1982 = vmatpush3.bf16.msra.mxu1 %v2290_v44 }
 0x301   :  { %1998 = vmatprep.subr.bf16.mxu1 %v2479_v45 }
 0x3b6   :  { %v1434_v51 = vpop.f32.mrb[8].mxu1 }
 0x3b7   :  { %v1435_v53 = vadd.f32 %v1434_v51, %v1313_v49  ;;  %v1436_v56 = vpop.f32.mrb[9].mxu1 }
 0x3b8   :  { %v1437_v57 = vadd.f32 %v1436_v56, %v1317_v50  ;;  %v1438_v58 = vpop.f32.mrb[10].mxu1 }
 0x3b9   :  { %v1441_v46 = vmax.f32 %v1435_v53, 0.0  ;;  %v1439_v59 = vpop.f32.mrb[11].mxu1 }
 0x3ba   :  { %v1442_v60 = vmax.f32 %v1437_v57, 0.0 }
 0x3bb   :  { %v1443_v63 = vpack.c.bf16 %v1441_v46, %v1441_v46 }
 0x3bc   :  { %v1444_v61 = vpack.c.bf16 %v1442_v60, %v1442_v60 }
 0x3be   :  { %1612 = vmatprep.mubr.bf16.mxu1 %v1444_v61 }
 0x3bf   :  { %1613 = vmatmul.mubr.bf16.vlgmr.msra.gmra.mrb[12].mxu1 %v1443_v63 }
 0x3c0   :  { %1999 = vmatpush3.bf16.msra.mxu1 %v2291_v62  ;;  %2014 = vmatprep.mubr.msk.bf16.mxu1 %vm2480_vm2, %v2479_v45 }
 0x3c1   :  { %2000 = vmatprep.subr.bf16.mxu1 %v2479_v45 }
 0x3c4   :  { %2001 = vmatpush3.bf16.msra.mxu1 %v2292_v0 }
 0x3c5   :  { %2002 = vmatprep.subr.bf16.mxu1 %v2479_v45 }
 0x3c8   :  { %2003 = vmatpush3.bf16.msra.mxu1 %v2293_v52 }
 0x3c9   :  { %2004 = vmatprep.subr.bf16.mxu1 %v2479_v45 }
 0x3cc   :  { %2005 = vmatpush3.bf16.msra.mxu1 %v2294_v15 }
 0x3cd   :  { %2006 = vmatprep.subr.bf16.mxu1 %v2479_v45 }
 0x3d0   :  { %2007 = vmatpush3.bf16.msra.mxu1 %v2295_v55 }
 0x3d1   :  { %2008 = vmatprep.subr.bf16.mxu1 %v2479_v45 }
 0x3d4   :  { %2009 = vmatpush3.bf16.msra.mxu1 %v2296_v1 }
 0x3d5   :  { %2010 = vmatprep.subr.bf16.mxu1 %v2479_v45 }
 0x3d8   :  { %2011 = vmatpush3.bf16.msra.mxu1 %v2297_v2 }
 0x3d9   :  { %2012 = vmatprep.subr.bf16.mxu1 %v2479_v45 }
 0x3dc   :  { %2013 = vmatpush3.bf16.msra.mxu1 %v2298_v3 }
 0x492   :  { %v1983_v4 = vpop.f32.mrb[12].mxu1 }
 0x493   :  { %v1984_v5 = vpop.f32.mrb[13].mxu1 }
 0x494   :  { %v1985_v6 = vadd.f32 %v1984_v5, %v1983_v4  ;;  %v1986_v18 = vpop.f32.mrb[14].mxu1 }
 0x495   :  { %v1987_v7 = vpop.f32.mrb[15].mxu1 }
 0x496   :  { %v1615_v8 = vadd.f32 %v1985_v6, %v1919_v48 }
 0x498   :  { %v1620_v9 = vmax.f32 %v1615_v8, 0.0 }
 0x49a   :  { %v1621_v10 = vpack.c.bf16 %v1620_v9, %v1620_v9 }
 0x49c   :  { %2015 = vmatmul.mubr.bf16.vlgmr.msra.gmra.mrb[16].mxu1 %v1621_v10 }
 0x56f   :  { %v1727_v12 = vpop.f32.mrb[16].mxu1 }
 0x570   :  { %v1728_v54 = vadd.f32 %v1936_v11, %v1727_v12  ;;  %v2016_v13 = vpop.f32.mrb[17].mxu1 }
 0x571   :  { %v1730_v14 = vpop.f32.mrb[18].mxu1 }
 0x572   :  { %v1733_v16 = vsub.f32 0.0, %v1728_v54  ;;  %v2017_v17 = vpop.f32.mrb[19].mxu1 }
 0x574   :  { %v1734_v19 = vmul.f32 1.442695, %v1733_v16 }
 0x576   :  { %2299 = vpow2.f32 %v1734_v19 }
 0x580   :  { %v2300_v20 = vpop.eup %2299 }
 0x581   :  { %v1736_v21 = vadd.f32 1.0, %v2300_v20 }
 0x583   :  { %2301 = vrcp.f32 %v1736_v21 }
 0x58d   :  { %v2302_v22 = vpop.eup %2301 }
 0x58e   :  { %1739 = vst [vmem:[#allocation13] sm:$0x3] %v2302_v22 }
 0x58f   :  { %2446 = shalt.err (!%p2443_p10)
}
 0x590   :  { %s2447_s3 = scalar_lea.hbm %s2719_s11, 32 }
 0x591   :  { %p2448_p11 = scmp.ne.s32.totalorder %s2719_s11, %s2447_s3  ;;  %p2451_p12 = scmp.lt.u32.totalorder %s2447_s3, %s2719_s11 }
 0x593   :  { %p2453_p13 = pnand %p2451_p12, %p2448_p11 }
 0x595   :  { %2456 = shalt.err (!%p2453_p13)
}
 0x596   :  { %1749 = dma.vmem_to_hbm [thread:$0]  %s1747_s16, 32, %s2719_s11, [#allocation4]  }
 0x597   :  { %2465 = dma.done.wait [#allocation4], 32  }
 0x598   :  { %2466 = vsyncadd [#allocation4], 4294967264 }
 0x599   :  { %1753 = vsyncpa [#allocation3], 1 }
 0x59a   :  { %1754 = vsyncpa [#allocation6], 1 }
 0x59b   :  { %1755 = vsyncpa [#allocation9], 1 }
 0x59c   :  { %1756 = vsyncpa [#allocation12], 1 }
 0x59d   :  { %1757 = vsyncpa [#allocation4], 1 }

</bundles_post_ra>
